<compile_context>
chip_gen: v7x
topology: tpu7x:2x2x1
jax: 0.10.0
libtpu: 0.0.40
codegen_flags: <defaults>
</compile_context>

<pallas_src>
import jax
import jax.numpy as jnp
from jax.experimental import pallas as pl
from jax.experimental.pallas import tpu as pltpu


def _crop_mse_partial_kernel(mask_ref, x_ref, y_ref, out_ref):
    """Partial sum of mask * (x - y)^2 for one (rows, cols) block."""
    d = x_ref[...].astype(jnp.float32) - y_ref[...].astype(jnp.float32)
    # Reduce over the sublane (row) axis first so the (1, t_hw) mask only
    # multiplies a single reduced row — no sublane broadcast of the mask.
    col_sums = jnp.sum(d * d, axis=0, keepdims=True)
    out_ref[0, 0] = jnp.sum(col_sums * mask_ref[...])


def _vmem_budgets():
    """(per-input block budget in f32-equivalent bytes, vmem_limit_bytes)."""
    try:
        vmem = pltpu.get_tpu_info().vmem_capacity_bytes
    except Exception:
        vmem = 64 * 1024 * 1024  # be conservative (v7x-sized) if query fails
    if vmem >= 100 * 1024 * 1024:
        # v5e / v6e: 128 MiB physical VMEM.
        return 8 * 1024 * 1024, 64 * 1024 * 1024
    # v7x: 64 MiB physical, 32 MiB scoped default.
    return 4 * 1024 * 1024, 32 * 1024 * 1024


def _largest_dividing_tile(extent, unit, limit):
    """Largest multiple of `unit` that divides `extent` and is <= limit (0 if none)."""
    d = (min(limit, extent) // unit) * unit
    while d >= unit:
        if extent % d == 0:
            return d
        d -= unit
    return 0


def _pick_tiles(nc, hw, max_elems, sub_mult):
    """Choose (t_nc, t_hw, nc_pad, hw_pad); padding only as a rare fallback."""
    # ---- column (lane) tile ----
    hw_pad = hw
    if sub_mult * hw <= max_elems:
        t_hw = hw  # full extent: always a legal block dim, mask trivially resident
    else:
        limit = max(128, (max_elems // sub_mult // 128) * 128)
        t_hw = _largest_dividing_tile(hw, 128, limit)
        if t_hw == 0:  # pathological hw: pad columns only (rare)
            t_hw = limit
            hw_pad = -(-hw // t_hw) * t_hw

    # ---- row (sublane) tile ----
    nc_pad = nc
    max_rows = max(sub_mult, max_elems // t_hw)
    if nc <= max_rows:
        t_nc = nc  # full extent
    else:
        t_nc = _largest_dividing_tile(nc, sub_mult, max_rows)
        if t_nc == 0:  # pathological nc: pad rows only (rare)
            t_nc = min((max_rows // sub_mult) * sub_mult,
                       -(-nc // sub_mult) * sub_mult)
            t_nc = max(t_nc, sub_mult)
            nc_pad = -(-nc // t_nc) * t_nc

    # v7x megacore: if everything collapsed into a single block but the work
    # is non-trivial, split the rows so there are >= 2 parallel grid steps.
    if (hw_pad // t_hw) * (nc_pad // t_nc) == 1 and nc * hw >= (1 << 19):
        half = _largest_dividing_tile(nc, sub_mult, nc // 2)
        if half:
            t_nc = half

    return t_nc, t_hw, nc_pad, hw_pad


def crop_margin_mse_loss(x, y, crop=5):
    """Pallas equivalent of CropMarginLoss(loss=nn.MSELoss, crop=crop)(x, y)."""
    assert x.shape == y.shape, "input/target shape mismatch"
    n, c, h, w = x.shape
    assert crop > 0 and h > 2 * crop and w > 2 * crop, \
        "spatial dims must exceed 2*crop"

    nc, hw = n * c, h * w
    itemsize = jnp.dtype(x.dtype).itemsize
    sub_mult = max(8, 32 // itemsize)  # native sublane multiple (8/16/32)

    budget_f32_bytes, vmem_limit = _vmem_budgets()
    max_elems = budget_f32_bytes // 4  # per-input block element budget

    t_nc, t_hw, nc_pad, hw_pad = _pick_tiles(nc, hw, max_elems, sub_mult)

    # 0/1 crop mask over the flattened spatial axis (built once; tiny).
    rows_in = (jnp.arange(h) >= crop) & (jnp.arange(h) < h - crop)
    cols_in = (jnp.arange(w) >= crop) & (jnp.arange(w) < w - crop)
    mask = (rows_in[:, None] & cols_in[None, :]).astype(jnp.float32)
    mask = mask.reshape(1, hw)

    # Lane-dense 2D layout: reshape of contiguous NCHW is free.
    xr = x.reshape(nc, hw)
    yr = y.reshape(nc, hw)

    # Rare fallback only — the tile picker chooses exact divisors whenever
    # possible, so the common path never pays an extra HBM read+write.
    if nc_pad != nc or hw_pad != hw:
        xr = jnp.pad(xr, ((0, nc_pad - nc), (0, hw_pad - hw)))
        yr = jnp.pad(yr, ((0, nc_pad - nc), (0, hw_pad - hw)))
        mask = jnp.pad(mask, ((0, 0), (0, hw_pad - hw)))

    col_blocks = hw_pad // t_hw
    row_blocks = nc_pad // t_nc
    # Column axis OUTER / slow so the mask block index is unchanged across
    # consecutive steps -> mask stays resident in VMEM.
    grid = (col_blocks, row_blocks)

    cost = pl.CostEstimate(
        flops=3 * nc_pad * hw_pad,
        transcendentals=0,
        bytes_accessed=2 * nc_pad * hw_pad * itemsize + 4 * hw_pad,
    )

    partials = pl.pallas_call(
        _crop_mse_partial_kernel,
        out_shape=jax.ShapeDtypeStruct(grid, jnp.float32),
        grid_spec=pltpu.PrefetchScalarGridSpec(
            num_scalar_prefetch=0,
            grid=grid,
            in_specs=[
                # Mask: block index only depends on the slow axis -> resident.
                pl.BlockSpec((1, t_hw), lambda j, i: (0, j)),
                pl.BlockSpec((t_nc, t_hw), lambda j, i: (i, j)),
                pl.BlockSpec((t_nc, t_hw), lambda j, i: (i, j)),
            ],
            out_specs=pl.BlockSpec(
                (1, 1), lambda j, i: (j, i), memory_space=pltpu.SMEM),
        ),
        compiler_params=pltpu.CompilerParams(
            # Each step writes its own partial -> fully parallel grid
            # (lets v7x shard across both TensorCores).
            dimension_semantics=("parallel", "parallel"),
            vmem_limit_bytes=vmem_limit,
        ),
        cost_estimate=cost,
    )(mask, xr, yr)

    count = nc * (h - 2 * crop) * (w - 2 * crop)
    total = jnp.sum(partials, dtype=jnp.float32)
    return (total / jnp.float32(count)).astype(x.dtype)


if __name__ == "__main__":
    key = jax.random.PRNGKey(0)
    kx, ky = jax.random.split(key)

    # Small shapes consistent with the module: NCHW, spatial > 2*crop.
    N, C, H, W = 2, 4, 16, 16
    CROP = 5

    x = jax.random.normal(kx, (N, C, H, W), dtype=jnp.float32)
    y = jax.random.normal(ky, (N, C, H, W), dtype=jnp.float32)

    loss = crop_margin_mse_loss(x, y, crop=CROP)
    loss = jax.block_until_ready(loss)

    # Pure-JAX reference check of the same semantics.
    ref = jnp.mean(
        (x[:, :, CROP:-CROP, CROP:-CROP] - y[:, :, CROP:-CROP, CROP:-CROP]) ** 2
    )
    assert jnp.allclose(loss, ref, rtol=1e-5, atol=1e-6), (loss, ref)

    print("KERNEL_OK")
</pallas_src>

<mosaic_0001>
module attributes {stable_mosaic.version = 11 : i64} {
  func.func @_crop_mse_partial_kernel(%arg0: i32, %arg1: i32, %arg2: memref<1x256xf32, #tpu.memory_space<vmem>>, %arg3: memref<8x256xf32, #tpu.memory_space<vmem>>, %arg4: memref<8x256xf32, #tpu.memory_space<vmem>>, %arg5: memref<1x1xf32, #tpu.memory_space<smem>>) attributes {dimension_semantics = [#tpu.dimension_semantics<parallel>, #tpu.dimension_semantics<parallel>], iteration_bounds = array<i64: 1, 1>, scalar_prefetch = 0 : i64, scratch_operands = 0 : i64, tpu.core_type = #tpu.core_type<tc>, window_params = [{transform_indices = @transform_0, window_bounds = array<i64: 1, 256>}, {transform_indices = @transform_1, window_bounds = array<i64: 8, 256>}, {transform_indices = @transform_2, window_bounds = array<i64: 8, 256>}, {transform_indices = @transform_3, window_bounds = array<i64: 1, 1>}]} {
    %c0 = arith.constant 0 : index
    %c0_0 = arith.constant 0 : index
    %0 = vector.load %arg3[%c0, %c0_0] : memref<8x256xf32, #tpu.memory_space<vmem>>, vector<8x256xf32>
    %c0_1 = arith.constant 0 : index
    %c0_2 = arith.constant 0 : index
    %1 = vector.load %arg4[%c0_1, %c0_2] : memref<8x256xf32, #tpu.memory_space<vmem>>, vector<8x256xf32>
    %2 = arith.subf %0, %1 : vector<8x256xf32>
    %3 = arith.mulf %2, %2 : vector<8x256xf32>
    %cst = arith.constant dense<0.000000e+00> : vector<256xf32>
    %4 = vector.multi_reduction <add>, %3, %cst [0] : vector<8x256xf32> to vector<256xf32>
    %5 = vector.shape_cast %4 : vector<256xf32> to vector<1x256xf32>
    %c0_3 = arith.constant 0 : index
    %c0_4 = arith.constant 0 : index
    %6 = vector.load %arg2[%c0_3, %c0_4] : memref<1x256xf32, #tpu.memory_space<vmem>>, vector<1x256xf32>
    %7 = arith.mulf %5, %6 : vector<1x256xf32>
    %8 = vector.shape_cast %7 : vector<1x256xf32> to vector<1x1x256xf32>
    %cst_5 = arith.constant dense<0.000000e+00> : vector<1xf32>
    %9 = vector.multi_reduction <add>, %8, %cst_5 [1, 2] : vector<1x1x256xf32> to vector<1xf32>
    %10 = vector.shape_cast %9 : vector<1xf32> to vector<1x1x1xf32>
    %11 = vector.extract %10[0, 0, 0] : f32 from vector<1x1x1xf32>
    %c0_6 = arith.constant 0 : index
    %c0_7 = arith.constant 0 : index
    %12 = memref.load %arg5[%c0_6, %c0_7] : memref<1x1xf32, #tpu.memory_space<smem>>
    memref.store %11, %arg5[%c0_6, %c0_7] : memref<1x1xf32, #tpu.memory_space<smem>>
    return
  }
  func.func @transform_0(%arg0: i32, %arg1: i32) -> (i32, i32) {
    %c0_i32 = arith.constant 0 : i32
    %c0_i32_0 = arith.constant 0 : i32
    return %c0_i32, %arg0 : i32, i32
  }
  func.func @transform_1(%arg0: i32, %arg1: i32) -> (i32, i32) {
    %c0_i32 = arith.constant 0 : i32
    return %arg1, %arg0 : i32, i32
  }
  func.func @transform_2(%arg0: i32, %arg1: i32) -> (i32, i32) {
    %c0_i32 = arith.constant 0 : i32
    return %arg1, %arg0 : i32, i32
  }
  func.func @transform_3(%arg0: i32, %arg1: i32) -> (i32, i32) {
    %c0_i32 = arith.constant 0 : i32
    return %arg0, %arg1 : i32, i32
  }
}

</mosaic_0001>

<bundles_post_ra>
// kernel: tpu_custom_call.1
= control target key start
LH: loop header
LB: loop body
LE: loop exit
PB: predicated region body
PF: predicated region fallthrough
CT: control target
= control target key end

     0   :  { %8 = vsyncpa [#allocation3], 0  ;;  %s274_s0 = inlined_call_operand.hbm [shape: f32[1,256], index: 0, kind: input, shape index: {}]   ;;  %s275_s1 = inlined_call_operand.hbm [shape: f32[8,256], index: 1, kind: input, shape index: {}]   ;;  %s276_s2 = inlined_call_operand.hbm [shape: f32[8,256], index: 2, kind: input, shape index: {}]   ;;  %s277_s3 = inlined_call_operand.hbm [shape: f32[1,1], index: 3, kind: output, shape index: {}]  }
   0x1   :  { %9 = vsyncpa [#allocation6], 0 }
   0x2   :  { %10 = vsyncpa [#allocation4], 0  ;;  %s202_s12 = smov [#allocation5]   ;;  %s203_s14 = smov [#allocation2]  }
   0x3   :  { %s27_s13 = sshll.u32 %s202_s12, 4  ;;  %s17_s15 = sshll.u32 %s203_s14, 4  ;;  %s28_s13 = int_to_ptr.vmem [resolvable:$true] %s27_s13  ;;  %s18_s15 = int_to_ptr.vmem [resolvable:$true] %s17_s15 }
   0x4   :  { %s120_s18 = scalar_lea.hbm %s275_s1, 256 }
   0x5   :  { %p121_p0 = scmp.ne.s32.totalorder %s275_s1, %s120_s18  ;;  %p124_p1 = scmp.lt.u32.totalorder %s120_s18, %s275_s1 }
   0x7   :  { %p126_p2 = pnand %p124_p1, %p121_p0 }
   0x9   :  { %129 = shalt.err (!%p126_p2)
}
   0xa   :  { %s130_s23 = scalar_lea.vmem %s28_s13, 256  ;;  %p135_p4 = scmp.lt.s32.totalorder %s28_s13, %s28_s13 }
   0xb   :  { %p131_p3 = scmp.ne.s32.totalorder %s28_s13, %s130_s23  ;;  %p136_p5 = scmp.lt.s32.totalorder %s130_s23, %s130_s23 }
   0xd   :  { %p137_p6 = por %p136_p5, %p135_p4 }
   0xf   :  { %p138_p7 = pnand %p137_p6, %p131_p3 }
  0x11   :  { %141 = shalt.err (!%p138_p7)
}
  0x12   :  { %30 = dma.hbm_to_vmem [thread:$0]  %s275_s1, 256, %s28_s13, [#allocation6]  }
  0x13   :  { %s142_s28 = scalar_lea.hbm %s274_s0, 32 }
  0x14   :  { %p143_p8 = scmp.ne.s32.totalorder %s274_s0, %s142_s28  ;;  %p146_p9 = scmp.lt.u32.totalorder %s142_s28, %s274_s0 }
  0x16   :  { %p148_p10 = pnand %p146_p9, %p143_p8 }
  0x18   :  { %151 = shalt.err (!%p148_p10)
}
  0x19   :  { %s152_s6 = scalar_lea.vmem %s18_s15, 32  ;;  %p157_p12 = scmp.lt.s32.totalorder %s18_s15, %s18_s15 }
  0x1a   :  { %p153_p11 = scmp.ne.s32.totalorder %s18_s15, %s152_s6  ;;  %p158_p13 = scmp.lt.s32.totalorder %s152_s6, %s152_s6 }
  0x1c   :  { %p159_p0 = por %p158_p13, %p157_p12 }
  0x1e   :  { %p160_p1 = pnand %p159_p0, %p153_p11 }
  0x20   :  { %163 = shalt.err (!%p160_p1)
}
  0x21   :  { %20 = dma.hbm_to_vmem [thread:$0]  %s274_s0, 32, %s18_s15, [#allocation3]  }
  0x22   :  { %s204_s8 = smov [#allocation7]   ;;  %s164_s12 = scalar_lea.hbm %s276_s2, 256 }
  0x23   :  { %s37_s9 = sshll.u32 %s204_s8, 4  ;;  %p165_p2 = scmp.ne.s32.totalorder %s276_s2, %s164_s12  ;;  %s38_s9 = int_to_ptr.vmem [resolvable:$true] %s37_s9 }
  0x24   :  { %p168_p3 = scmp.lt.u32.totalorder %s164_s12, %s276_s2 }
  0x26   :  { %p170_p4 = pnand %p168_p3, %p165_p2 }
  0x28   :  { %173 = shalt.err (!%p170_p4)
}
  0x29   :  { %s174_s18 = scalar_lea.vmem %s38_s9, 256  ;;  %p179_p6 = scmp.lt.s32.totalorder %s38_s9, %s38_s9 }
  0x2a   :  { %p175_p5 = scmp.ne.s32.totalorder %s38_s9, %s174_s18  ;;  %p180_p7 = scmp.lt.s32.totalorder %s174_s18, %s174_s18 }
  0x2c   :  { %p181_p8 = por %p180_p7, %p179_p6 }
  0x2e   :  { %p182_p9 = pnand %p181_p8, %p175_p5 }
  0x30   :  { %185 = shalt.err (!%p182_p9)
}
  0x31   :  { %40 = dma.hbm_to_vmem [thread:$0]  %s276_s2, 256, %s38_s9, [#allocation6]  }
  0x32   :  { %196 = dma.done.wait [#allocation3], 32  }
  0x33   :  { %197 = vsyncadd [#allocation3], 4294967264 }
  0x34   :  { %198 = dma.done.wait [#allocation6], 512  }
  0x35   :  { %199 = vsyncadd [#allocation6], 4294966784  ;;  %v50_v0 = vld [vmem:[#allocation5] sm:$0xff]  ;;  %v51_v1 = vld [vmem:[#allocation5 + $0x8] sm:$0xff]  ;;  %v72_v5 = vlaneseq  ;;  %vm84_vm0 = vcmask 1040384   ;;  %s186_s21 = scalar_lea.hbm %s277_s3, 16 }
  0x36   :  { %v52_v2 = vld [vmem:[#allocation7] sm:$0xff]  ;;  %v53_v3 = vld [vmem:[#allocation7 + $0x8] sm:$0xff]  ;;  %p187_p10 = scmp.ne.s32.totalorder %s277_s3, %s186_s21  ;;  %p190_p11 = scmp.lt.u32.totalorder %s186_s21, %s277_s3 }
  0x37   :  { %v54_v4 = vsub.f32 %v50_v0, %v52_v2  ;;  %v55_v6 = vsub.f32 %v51_v1, %v53_v3  ;;  %v73_v10 = vshrl.u32 %v72_v5, 7  ;;  %v70_v17 = vld [vmem:[#allocation2] sm:$0x3] }
  0x38   :  { %p192_p12 = pnand %p190_p11, %p187_p10 }
  0x39   :  { %v56_v7 = vmul.f32 %v54_v4, %v54_v4  ;;  %v57_v8 = vmul.f32 %v55_v6, %v55_v6  ;;  %v74_v15 = vsub.s32 0, %v73_v10  ;;  %v78_v18 = vsub.s32 1, %v73_v10 }
  0x3b   :  { %v58_v9 = vrot.slane %v56_v7, 4  ;;  %v64_v11 = vrot.slane %v57_v8, 4  ;;  %v75_v22 = vrot.slane %v70_v17, %v74_v15  ;;  %v79_v24 = vrot.slane %v70_v17, %v78_v18 }
  0x3d   :  { %v59_v12 = vadd.f32 %v58_v9, %v56_v7  ;;  %v65_v13 = vadd.f32 %v64_v11, %v57_v8 }
  0x3f   :  { %v60_v14 = vrot.slane %v59_v12, 2  ;;  %v66_v16 = vrot.slane %v65_v13, 2 }
  0x41   :  { %v61_v19 = vadd.f32 %v60_v14, %v59_v12  ;;  %v67_v20 = vadd.f32 %v66_v16, %v65_v13 }
  0x43   :  { %v62_v21 = vrot.slane %v61_v19, 1  ;;  %v68_v23 = vrot.slane %v67_v20, 1 }
  0x45   :  { %v63_v25 = vadd.f32 %v62_v21, %v61_v19  ;;  %v69_v26 = vadd.f32 %v68_v23, %v67_v20 }
  0x47   :  { %v82_v27 = vmul.f32 %v75_v22, %v63_v25  ;;  %v83_v28 = vmul.f32 %v79_v24, %v69_v26 }
  0x49   :  { %v85_v29 = vsel %vm84_vm0, %v82_v27, 0.0  ;;  %v86_v30 = vsel %vm84_vm0, %v83_v28, 0.0 }
  0x4a   :  { %v87_v31 = vadd.f32 %v86_v30, %v85_v29 }
  0x4c   :  { %88 = vadd.xlane.f32.xlu0 %v87_v31 }
  0xd9   :  { %v89_v32 = vpop.xlane.xlu0 %88 }
  0xda   :  { %v90_v33 = vrot.slane %v89_v32, 4 }
  0xdc   :  { %v91_v34 = vadd.f32 %v90_v33, %v89_v32 }
  0xde   :  { %v92_v35 = vrot.slane %v91_v34, 2 }
  0xe0   :  { %v93_v36 = vadd.f32 %v92_v35, %v91_v34 }
  0xe2   :  { %v94_v37 = vrot.slane %v93_v36, 1 }
  0xe4   :  { %v95_v38 = vadd.f32 %v94_v37, %v93_v36 }
  0xe6   :  { %114 = vpush %v95_v38 }
 0x117   :  { %s115_s2 = spop %114 }
 0x118   :  { %98 = sst [smem:[#allocation8]] %s115_s2 }
 0x119   :  { %195 = shalt.err (!%p192_p12)
}
 0x11a   :  { %s205_s26 = smov [#allocation8]  }
 0x11b   :  { %106 = dma.smem_to_hbm %s205_s26, 16, %s277_s3, [#allocation4]  }
 0x11c   :  { %200 = dma.done.wait [#allocation4], 16  }
 0x11d   :  { %201 = vsyncadd [#allocation4], 4294967280 }
 0x11e   :  { %110 = sfence }
 0x11f   :  { %111 = vsyncpa [#allocation3], 1 }
 0x120   :  { %112 = vsyncpa [#allocation6], 1 }
 0x121   :  { %113 = vsyncpa [#allocation4], 1 }

</bundles_post_ra>
